<compile_context>
chip_gen: v7x
topology: tpu7x:2x2x1
jax: 0.10.0
libtpu: 0.0.40
codegen_flags: <defaults>
</compile_context>

<pallas_src>
import jax
import jax.numpy as jnp
from jax.experimental import pallas as pl
from jax.experimental.pallas import tpu as pltpu


def sepconv1d_kernel(x_ref, dw_ref, db_ref, pwt_ref, pb_ref, o_ref):
    # x_ref  : (B_blk, C_in, L)       VMEM, channels-first input slab
    # dw_ref : (C_in, K)              VMEM, depthwise taps (column k = tap k)
    # db_ref : (C_in, 1)              VMEM, depthwise bias
    # pwt_ref: (C_out, C_in)          VMEM, pointwise weight (already (o, c))
    # pb_ref : (C_out, 1)             VMEM, pointwise bias
    # o_ref  : (B_blk, C_out, L_out)  VMEM, channels-first, L_out lane-dense
    B_blk = x_ref.shape[0]
    L_out = o_ref.shape[2]
    K = dw_ref.shape[1]

    dw = dw_ref[...].astype(jnp.float32)     # (C_in, K)
    db = db_ref[...].astype(jnp.float32)     # (C_in, 1)
    pwt = pwt_ref[...]                       # (C_out, C_in)
    pb = pb_ref[...].astype(jnp.float32)     # (C_out, 1)

    # B_blk and K are static Python ints -> both loops are fully unrolled.
    for b in range(B_blk):
        xb = x_ref[b]                        # (C_in, L); small tile, fits registers.
        # Depthwise conv along lanes, f32 accumulation, bias added exactly once.
        y = db                               # (C_in, 1) broadcasts up to (C_in, L_out)
        for k in range(K):
            y = y + xb[:, k:k + L_out].astype(jnp.float32) * dw[:, k:k + 1]
        y = jnp.maximum(y, 0.0)              # ReLU

        # Pointwise 1x1 conv = one MXU matmul: (C_out, C_in) @ (C_in, L_out).
        z = jnp.dot(pwt, y.astype(pwt.dtype), preferred_element_type=jnp.float32)
        o_ref[b] = (z + pb).astype(o_ref.dtype)   # lane-dense (C_out, L_out) store


def _pick_batch_block(B, per_batch_bytes):
    """Up to 8 batch elements per grid step, bounded so blocks stay small in VMEM,
    and an exact divisor of B so every block is full."""
    cap = max(1, (8 * 1024 * 1024) // max(per_batch_bytes, 1))
    b_blk = max(1, min(B, 8, cap))
    while B % b_blk:
        b_blk -= 1
    return b_blk


def _vmem_limit_bytes(b_blk, C_in, L, C_out, L_out, K, itemsize):
    """Explicit VMEM budget: double-buffered input/output blocks + weights + f32 temps,
    with headroom, capped below v7x's 64 MiB physical VMEM."""
    x_blk = b_blk * C_in * L * itemsize
    o_blk = b_blk * C_out * L_out * itemsize
    w = (C_in * K + C_in + C_in * C_out + C_out) * itemsize
    f32_tmp = (C_in + C_out) * L_out * 4          # y and z live values (per batch elem)
    need = 2 * (x_blk + o_blk + w) + f32_tmp
    return int(min(48 * 1024 * 1024, max(16 * 1024 * 1024, 2 * need)))


def sepconv1d(x, depthwise_weight, depthwise_bias, pointwise_weight, pointwise_bias):
    """x: (B, C_in, L). PyTorch param shapes:
       depthwise_weight (C_in, 1, K), depthwise_bias (C_in,),
       pointwise_weight (C_out, C_in, 1), pointwise_bias (C_out,).
       Returns (B, C_out, L_out), L_out = L - K + 1 (stride=1, padding=0, dilation=1)."""
    B, C_in, L = x.shape
    K = depthwise_weight.shape[2]
    C_out = pointwise_weight.shape[0]
    L_out = L - K + 1
    # TODO(synk): support stride != 1 / padding != 0 / dilation != 1 (module defaults only).

    # One-time *weight-only* layout glue (tiny); no activation transposes anywhere.
    dw = depthwise_weight[:, 0, :]                  # (C_in, K)
    db = depthwise_bias.reshape(C_in, 1)            # (C_in, 1)
    pwt = pointwise_weight[:, :, 0]                 # (C_out, C_in)
    pb = pointwise_bias.reshape(C_out, 1)           # (C_out, 1)

    itemsize = jnp.dtype(x.dtype).itemsize
    per_batch_bytes = (C_in * L + C_out * L_out) * itemsize
    b_blk = _pick_batch_block(B, per_batch_bytes)
    vmem_limit = _vmem_limit_bytes(b_blk, C_in, L, C_out, L_out, K, itemsize)

    # TODO(synk): for very long sequences, add an L_out tile axis with a K-1 halo
    # (second "parallel" grid axis) instead of one whole-length block per batch, and
    # re-derive b_blk/vmem_limit for that tiling.
    return pl.pallas_call(
        sepconv1d_kernel,
        out_shape=jax.ShapeDtypeStruct((B, C_out, L_out), x.dtype),
        grid_spec=pltpu.PrefetchScalarGridSpec(
            num_scalar_prefetch=0,
            grid=(B // b_blk,),
            in_specs=[
                pl.BlockSpec((b_blk, C_in, L), lambda g: (g, 0, 0)),
                pl.BlockSpec((C_in, K), lambda g: (0, 0)),
                pl.BlockSpec((C_in, 1), lambda g: (0, 0)),
                pl.BlockSpec((C_out, C_in), lambda g: (0, 0)),
                pl.BlockSpec((C_out, 1), lambda g: (0, 0)),
            ],
            out_specs=pl.BlockSpec((b_blk, C_out, L_out), lambda g: (g, 0, 0)),
        ),
        compiler_params=pltpu.CompilerParams(
            dimension_semantics=("parallel",),
            vmem_limit_bytes=vmem_limit,
        ),
    )(x, dw, db, pwt, pb)


def sepconv1d_reference(x, depthwise_weight, depthwise_bias,
                        pointwise_weight, pointwise_bias):
    """Pure-JAX reference: depthwise Conv1d (s=1, p=0, d=1) -> ReLU -> pointwise Conv1d."""
    B, C_in, L = x.shape
    K = depthwise_weight.shape[2]
    L_out = L - K + 1
    w = depthwise_weight[:, 0, :]                             # (C_in, K)
    y = jnp.zeros((B, C_in, L_out), jnp.float32)
    for k in range(K):
        y = y + x[:, :, k:k + L_out] * w[:, k][None, :, None]
    y = y + depthwise_bias[None, :, None]
    y = jnp.maximum(y, 0.0)
    z = jnp.einsum("bcl,oc->bol", y, pointwise_weight[:, :, 0],
                   precision=jax.lax.Precision.HIGHEST)
    return z + pointwise_bias[None, :, None]


if __name__ == "__main__":
    # Matches the module docstring example: SepConv1d(32, 64, 3) on x (2, 32, 200).
    B, C_in, C_out, L, K = 2, 32, 64, 200, 3

    key = jax.random.PRNGKey(0)
    kx, kdw, kdb, kpw, kpb = jax.random.split(key, 5)

    x = jax.random.normal(kx, (B, C_in, L), dtype=jnp.float32)

    dw_bound = 1.0 / (1 * K) ** 0.5      # depthwise fan_in = (C_in / groups) * K = K
    pw_bound = 1.0 / (C_in * 1) ** 0.5   # pointwise fan_in = C_in
    depthwise_weight = jax.random.uniform(kdw, (C_in, 1, K), jnp.float32,
                                          -dw_bound, dw_bound)
    depthwise_bias = jax.random.uniform(kdb, (C_in,), jnp.float32,
                                        -dw_bound, dw_bound)
    pointwise_weight = jax.random.uniform(kpw, (C_out, C_in, 1), jnp.float32,
                                          -pw_bound, pw_bound)
    pointwise_bias = jax.random.uniform(kpb, (C_out,), jnp.float32,
                                        -pw_bound, pw_bound)

    out = sepconv1d(x, depthwise_weight, depthwise_bias,
                    pointwise_weight, pointwise_bias)
    out = jax.block_until_ready(out)

    ref = sepconv1d_reference(x, depthwise_weight, depthwise_bias,
                              pointwise_weight, pointwise_bias)
    assert out.shape == (B, C_out, L - K + 1), out.shape
    max_err = float(jnp.max(jnp.abs(out - ref)))
    assert jnp.allclose(out, ref, atol=1e-4, rtol=1e-4), max_err

    print("KERNEL_OK")
</pallas_src>

<mosaic_0001>
module attributes {stable_mosaic.version = 11 : i64} {
  func.func @sepconv1d_kernel(%arg0: i32, %arg1: memref<2x32x200xf32, #tpu.memory_space<vmem>>, %arg2: memref<32x3xf32, #tpu.memory_space<vmem>>, %arg3: memref<32x1xf32, #tpu.memory_space<vmem>>, %arg4: memref<64x32xf32, #tpu.memory_space<vmem>>, %arg5: memref<64x1xf32, #tpu.memory_space<vmem>>, %arg6: memref<2x64x198xf32, #tpu.memory_space<vmem>>) attributes {dimension_semantics = [#tpu.dimension_semantics<parallel>], iteration_bounds = array<i64: 1>, scalar_prefetch = 0 : i64, scratch_operands = 0 : i64, tpu.core_type = #tpu.core_type<tc>, window_params = [{transform_indices = @transform_0, window_bounds = array<i64: 2, 32, 200>}, {pipeline_mode = #tpu.pipeline_mode<synchronous>, transform_indices = @transform_1, window_bounds = array<i64: 32, 3>}, {pipeline_mode = #tpu.pipeline_mode<synchronous>, transform_indices = @transform_2, window_bounds = array<i64: 32, 1>}, {pipeline_mode = #tpu.pipeline_mode<synchronous>, transform_indices = @transform_3, window_bounds = array<i64: 64, 32>}, {pipeline_mode = #tpu.pipeline_mode<synchronous>, transform_indices = @transform_4, window_bounds = array<i64: 64, 1>}, {transform_indices = @transform_5, window_bounds = array<i64: 2, 64, 198>}]} {
    %c0 = arith.constant 0 : index
    %c0_0 = arith.constant 0 : index
    %0 = vector.load %arg2[%c0, %c0_0] : memref<32x3xf32, #tpu.memory_space<vmem>>, vector<32x3xf32>
    %c0_1 = arith.constant 0 : index
    %c0_2 = arith.constant 0 : index
    %1 = vector.load %arg3[%c0_1, %c0_2] : memref<32x1xf32, #tpu.memory_space<vmem>>, vector<32x1xf32>
    %c0_3 = arith.constant 0 : index
    %c0_4 = arith.constant 0 : index
    %2 = vector.load %arg4[%c0_3, %c0_4] : memref<64x32xf32, #tpu.memory_space<vmem>>, vector<64x32xf32>
    %c0_5 = arith.constant 0 : index
    %c0_6 = arith.constant 0 : index
    %3 = vector.load %arg5[%c0_5, %c0_6] : memref<64x1xf32, #tpu.memory_space<vmem>>, vector<64x1xf32>
    %c0_7 = arith.constant 0 : index
    %c0_8 = arith.constant 0 : index
    %c0_9 = arith.constant 0 : index
    %4 = vector.load %arg1[%c0_7, %c0_8, %c0_9] : memref<2x32x200xf32, #tpu.memory_space<vmem>>, vector<1x32x200xf32>
    %5 = vector.shape_cast %4 : vector<1x32x200xf32> to vector<32x200xf32>
    %6 = vector.extract_strided_slice %5 {offsets = [0, 0], sizes = [32, 198], strides = [1, 1]} : vector<32x200xf32> to vector<32x198xf32>
    %7 = vector.extract_strided_slice %0 {offsets = [0, 0], sizes = [32, 1], strides = [1, 1]} : vector<32x3xf32> to vector<32x1xf32>
    %8 = vector.broadcast %7 : vector<32x1xf32> to vector<32x198xf32>
    %9 = arith.mulf %6, %8 : vector<32x198xf32>
    %10 = vector.broadcast %1 : vector<32x1xf32> to vector<32x198xf32>
    %11 = arith.addf %10, %9 : vector<32x198xf32>
    %12 = vector.extract_strided_slice %5 {offsets = [0, 1], sizes = [32, 198], strides = [1, 1]} : vector<32x200xf32> to vector<32x198xf32>
    %13 = vector.extract_strided_slice %0 {offsets = [0, 1], sizes = [32, 1], strides = [1, 1]} : vector<32x3xf32> to vector<32x1xf32>
    %14 = vector.broadcast %13 : vector<32x1xf32> to vector<32x198xf32>
    %15 = arith.mulf %12, %14 : vector<32x198xf32>
    %16 = arith.addf %11, %15 : vector<32x198xf32>
    %17 = vector.extract_strided_slice %5 {offsets = [0, 2], sizes = [32, 198], strides = [1, 1]} : vector<32x200xf32> to vector<32x198xf32>
    %18 = vector.extract_strided_slice %0 {offsets = [0, 2], sizes = [32, 1], strides = [1, 1]} : vector<32x3xf32> to vector<32x1xf32>
    %19 = vector.broadcast %18 : vector<32x1xf32> to vector<32x198xf32>
    %20 = arith.mulf %17, %19 : vector<32x198xf32>
    %21 = arith.addf %16, %20 : vector<32x198xf32>
    %cst = arith.constant 0.000000e+00 : f32
    %22 = vector.broadcast %cst : f32 to vector<32x198xf32>
    %23 = arith.maximumf %21, %22 : vector<32x198xf32>
    %cst_10 = arith.constant dense<0.000000e+00> : vector<64x198xf32>
    %24 = tpu.matmul %2, %23, %cst_10 {dimension_numbers = #tpu.dot_dimension_numbers<[1], [0], [0], [1], [0, 0, 1, 1], [], []>} : vector<64x32xf32>, vector<32x198xf32>, vector<64x198xf32> -> vector<64x198xf32>
    %25 = vector.broadcast %3 : vector<64x1xf32> to vector<64x198xf32>
    %26 = arith.addf %24, %25 : vector<64x198xf32>
    %c0_11 = arith.constant 0 : index
    %c0_12 = arith.constant 0 : index
    %c0_13 = arith.constant 0 : index
    %27 = vector.load %arg6[%c0_11, %c0_12, %c0_13] : memref<2x64x198xf32, #tpu.memory_space<vmem>>, vector<1x64x198xf32>
    %28 = vector.shape_cast %27 : vector<1x64x198xf32> to vector<64x198xf32>
    %29 = vector.shape_cast %26 : vector<64x198xf32> to vector<1x64x198xf32>
    tpu.vector_store %arg6[%c0_11, %c0_12, %c0_13], %29 {strides = array<i32>} : memref<2x64x198xf32, #tpu.memory_space<vmem>>, vector<1x64x198xf32>,
    %c1 = arith.constant 1 : index
    %c0_14 = arith.constant 0 : index
    %c0_15 = arith.constant 0 : index
    %30 = vector.load %arg1[%c1, %c0_14, %c0_15] : memref<2x32x200xf32, #tpu.memory_space<vmem>>, vector<1x32x200xf32>
    %31 = vector.shape_cast %30 : vector<1x32x200xf32> to vector<32x200xf32>
    %32 = vector.extract_strided_slice %31 {offsets = [0, 0], sizes = [32, 198], strides = [1, 1]} : vector<32x200xf32> to vector<32x198xf32>
    %33 = vector.extract_strided_slice %0 {offsets = [0, 0], sizes = [32, 1], strides = [1, 1]} : vector<32x3xf32> to vector<32x1xf32>
    %34 = vector.broadcast %33 : vector<32x1xf32> to vector<32x198xf32>
    %35 = arith.mulf %32, %34 : vector<32x198xf32>
    %36 = vector.broadcast %1 : vector<32x1xf32> to vector<32x198xf32>
    %37 = arith.addf %36, %35 : vector<32x198xf32>
    %38 = vector.extract_strided_slice %31 {offsets = [0, 1], sizes = [32, 198], strides = [1, 1]} : vector<32x200xf32> to vector<32x198xf32>
    %39 = vector.extract_strided_slice %0 {offsets = [0, 1], sizes = [32, 1], strides = [1, 1]} : vector<32x3xf32> to vector<32x1xf32>
    %40 = vector.broadcast %39 : vector<32x1xf32> to vector<32x198xf32>
    %41 = arith.mulf %38, %40 : vector<32x198xf32>
    %42 = arith.addf %37, %41 : vector<32x198xf32>
    %43 = vector.extract_strided_slice %31 {offsets = [0, 2], sizes = [32, 198], strides = [1, 1]} : vector<32x200xf32> to vector<32x198xf32>
    %44 = vector.extract_strided_slice %0 {offsets = [0, 2], sizes = [32, 1], strides = [1, 1]} : vector<32x3xf32> to vector<32x1xf32>
    %45 = vector.broadcast %44 : vector<32x1xf32> to vector<32x198xf32>
    %46 = arith.mulf %43, %45 : vector<32x198xf32>
    %47 = arith.addf %42, %46 : vector<32x198xf32>
    %cst_16 = arith.constant 0.000000e+00 : f32
    %48 = vector.broadcast %cst_16 : f32 to vector<32x198xf32>
    %49 = arith.maximumf %47, %48 : vector<32x198xf32>
    %cst_17 = arith.constant dense<0.000000e+00> : vector<64x198xf32>
    %50 = tpu.matmul %2, %49, %cst_17 {dimension_numbers = #tpu.dot_dimension_numbers<[1], [0], [0], [1], [0, 0, 1, 1], [], []>} : vector<64x32xf32>, vector<32x198xf32>, vector<64x198xf32> -> vector<64x198xf32>
    %51 = vector.broadcast %3 : vector<64x1xf32> to vector<64x198xf32>
    %52 = arith.addf %50, %51 : vector<64x198xf32>
    %c1_18 = arith.constant 1 : index
    %c0_19 = arith.constant 0 : index
    %c0_20 = arith.constant 0 : index
    %53 = vector.load %arg6[%c1_18, %c0_19, %c0_20] : memref<2x64x198xf32, #tpu.memory_space<vmem>>, vector<1x64x198xf32>
    %54 = vector.shape_cast %53 : vector<1x64x198xf32> to vector<64x198xf32>
    %55 = vector.shape_cast %52 : vector<64x198xf32> to vector<1x64x198xf32>
    tpu.vector_store %arg6[%c1_18, %c0_19, %c0_20], %55 {strides = array<i32>} : memref<2x64x198xf32, #tpu.memory_space<vmem>>, vector<1x64x198xf32>,
    return
  }
  func.func @transform_0(%arg0: i32) -> (i32, i32, i32) {
    %c0_i32 = arith.constant 0 : i32
    %c0_i32_0 = arith.constant 0 : i32
    %c0_i32_1 = arith.constant 0 : i32
    return %arg0, %c0_i32, %c0_i32_0 : i32, i32, i32
  }
  func.func @transform_1(%arg0: i32) -> (i32, i32) {
    %c0_i32 = arith.constant 0 : i32
    %c0_i32_0 = arith.constant 0 : i32
    %c0_i32_1 = arith.constant 0 : i32
    return %c0_i32, %c0_i32_0 : i32, i32
  }
  func.func @transform_2(%arg0: i32) -> (i32, i32) {
    %c0_i32 = arith.constant 0 : i32
    %c0_i32_0 = arith.constant 0 : i32
    %c0_i32_1 = arith.constant 0 : i32
    return %c0_i32, %c0_i32_0 : i32, i32
  }
  func.func @transform_3(%arg0: i32) -> (i32, i32) {
    %c0_i32 = arith.constant 0 : i32
    %c0_i32_0 = arith.constant 0 : i32
    %c0_i32_1 = arith.constant 0 : i32
    return %c0_i32, %c0_i32_0 : i32, i32
  }
  func.func @transform_4(%arg0: i32) -> (i32, i32) {
    %c0_i32 = arith.constant 0 : i32
    %c0_i32_0 = arith.constant 0 : i32
    %c0_i32_1 = arith.constant 0 : i32
    return %c0_i32, %c0_i32_0 : i32, i32
  }
  func.func @transform_5(%arg0: i32) -> (i32, i32, i32) {
    %c0_i32 = arith.constant 0 : i32
    %c0_i32_0 = arith.constant 0 : i32
    %c0_i32_1 = arith.constant 0 : i32
    return %arg0, %c0_i32, %c0_i32_0 : i32, i32, i32
  }
}

</mosaic_0001>

<bundles_post_ra>
// kernel: tpu_custom_call.1
= control target key start
LH: loop header
LB: loop body
LE: loop exit
PB: predicated region body
PF: predicated region fallthrough
CT: control target
= control target key end

     0   :  { %v813_v1 = vmov 1   ;;  %v814_v2 = vmov 2   ;;  %s1184_s0 = inlined_call_operand.vmem [shape: f32[2,32,200], index: 0, kind: input, shape index: {}]   ;;  %s1185_s1 = inlined_call_operand.vmem [shape: f32[32,3], index: 1, kind: input, shape index: {}]   ;;  %s1186_s2 = inlined_call_operand.vmem [shape: f32[32,1], index: 2, kind: input, shape index: {}]   ;;  %s1187_s3 = inlined_call_operand.vmem [shape: f32[64,32], index: 3, kind: input, shape index: {}]   ;;  %s1188_s4 = inlined_call_operand.vmem [shape: f32[64,1], index: 4, kind: input, shape index: {}]   ;;  %s1189_s5 = inlined_call_operand.hbm [shape: f32[2,64,198], index: 5, kind: output, shape index: {}]  }
   0x1   :  { %v21_v0 = vld [vmem:[%s1185_s1] sm:$0xff]  ;;  %782 = vset.pattern.permute.xlu0 %v813_v1  ;;  %783 = vset.pattern.permute.xlu1 %v814_v2  ;;  %v22_v3 = vld [vmem:[%s1185_s1 + $0x8] sm:$0xff] }
   0x2   :  { %110 = vperm.xlu0 %782, %v21_v0   ;;  %179 = vperm.xlu1 %783, %v21_v0  }
   0x3   :  { %10 = vsyncpa [#allocation3], 0  ;;  %v23_v4 = vld [vmem:[%s1185_s1 + $0x10] sm:$0xff]  ;;  %v24_v5 = vld [vmem:[%s1185_s1 + $0x18] sm:$0xff]  ;;  %v815_v6 = vmov 0   ;;  %s816_s15 = smov 127  }
   0x4   :  { %v25_v7 = vld [vmem:[%s1186_s2] sm:$0xff]  ;;  %v27_v8 = vld [vmem:[%s1186_s2 + $0x10] sm:$0xff]  ;;  %v26_v9 = vld [vmem:[%s1186_s2 + $0x8] sm:$0xff]  ;;  %s817_s24 = smov 126   ;;  %v818_v63 = vmov 0.0   ;;  %vm157_vm0 = vcmask 1039360  }
   0x5   :  { %v28_v10 = vld [vmem:[%s1186_s2 + $0x18] sm:$0xff]  ;;  %v879_v11 = vld [vmem:[%s1184_s0 + $0x8] sm:$0xff]  ;;  %v884_v12 = vld [vmem:[%s1184_s0] sm:$0xff]  ;;  %384 = vmatprep.mubr.f32.mxu0 %v818_v63  ;;  %651 = vmatprep.mubr.f32.mxu1 %v818_v63  ;;  %vm226_vm1 = vcmask 1031168   ;;  %vm295_vm2 = vcmask 261120   ;;  %vm434_vm3 = vcmask 572416  }
   0x6   :  { %114 = vperm.xlu0 %782, %v22_v3   ;;  %183 = vperm.xlu1 %783, %v22_v3   ;;  %v891_v16 = vld [vmem:[%s1184_s0 + $0x18] sm:$0xff]  ;;  %v896_v17 = vld [vmem:[%s1184_s0 + $0x10] sm:$0xff]  ;;  %v905_v21 = vld [vmem:[%s1184_s0 + $0x48] sm:$0xff] }
   0x7   :  { %v910_v22 = vld [vmem:[%s1184_s0 + $0x40] sm:$0xff]  ;;  %v919_v25 = vld [vmem:[%s1184_s0 + $0x58] sm:$0xff]  ;;  %v924_v26 = vld [vmem:[%s1184_s0 + $0x50] sm:$0xff] }
   0x8   :  { %v949_v40 = vld [vmem:[%s1184_s0 + $0x28] sm:$0xff]  ;;  %v954_v41 = vld [vmem:[%s1184_s0 + $0x20] sm:$0xff]  ;;  %v961_v43 = vld [vmem:[%s1184_s0 + $0x38] sm:$0xff] }
   0x9   :  { %v966_v44 = vld [vmem:[%s1184_s0 + $0x30] sm:$0xff]  ;;  %v977_v49 = vld [vmem:[%s1184_s0 + $0x68] sm:$0xff]  ;;  %v982_v50 = vld [vmem:[%s1184_s0 + $0x60] sm:$0xff] }
   0xa   :  { %118 = vperm.xlu0 %782, %v23_v4   ;;  %784 = vset.pattern.permute.xlu1 %v813_v1  ;;  %v991_v53 = vld [vmem:[%s1184_s0 + $0x78] sm:$0xff]  ;;  %v996_v54 = vld [vmem:[%s1184_s0 + $0x70] sm:$0xff] }
   0xb   :  { %122 = vperm.xlu1 %784, %v24_v5  }
   0xe   :  { %785 = vset.pattern.permute.xlu0 %v814_v2 }
   0xf   :  { %187 = vperm.xlu0 %785, %v23_v4   ;;  %786 = vset.pattern.permute.xlu1 %v814_v2 }
  0x10   :  { %191 = vperm.xlu1 %786, %v24_v5  }
  0x13   :  { %788 = vset.pattern.permute.xlu0 %v815_v6 }
  0x14   :  { %787 = vset.pattern.permute.xlu1 %v815_v6  ;;  %60 = vperm.xlu0 %788, %v22_v3   ;;  %v40_v6 = vld [vmem:[%s1188_s4 + $0x18] sm:$0xff] }
  0x15   :  { %55 = vperm.xlu1 %787, %v21_v0  }
  0x18   :  { %65 = vperm.xlu0 %788, %v23_v4   ;;  %v38_v4 = vld [vmem:[%s1188_s4 + $0x8] sm:$0xff] }
  0x19   :  { %83 = vperm.xlu1 %787, %v25_v7   ;;  %v39_v7 = vld [vmem:[%s1188_s4 + $0x10] sm:$0xff] }
  0x1c   :  { %93 = vperm.xlu0 %788, %v27_v8   ;;  %v42_v8 = vld [vmem:[%s1188_s4 + $0x28] sm:$0xff] }
  0x1d   :  { %88 = vperm.xlu1 %787, %v26_v9   ;;  %v41_v9 = vld [vmem:[%s1188_s4 + $0x20] sm:$0xff] }
  0x21   :  { %70 = vperm.xlu1 %787, %v24_v5   ;;  %v37_v5 = vld [vmem:[%s1188_s4] sm:$0xff] }
  0x25   :  { %98 = vperm.xlu1 %787, %v28_v10   ;;  %v44_v10 = vld [vmem:[%s1188_s4 + $0x38] sm:$0xff] }
  0x81   :  { %v111_v13 = vpop.permute.xlu0 %110  ;;  %v180_v27 = vpop.permute.xlu1 %179 }
  0x82   :  { %v126_v14 = vmul.f32 %v111_v13, %v879_v11  ;;  %v125_v15 = vmul.f32 %v111_v13, %v884_v12  ;;  %v476_v23 = vmul.f32 %v905_v21, %v111_v13  ;;  %v475_v24 = vmul.f32 %v910_v22, %v111_v13  ;;  %v43_v13 = vld [vmem:[%s1188_s4 + $0x30] sm:$0xff] }
  0x83   :  { %v195_v30 = vmul.f32 %v180_v27, %v879_v11  ;;  %v194_v31 = vmul.f32 %v180_v27, %v884_v12  ;;  %v528_v35 = vmul.f32 %v905_v21, %v180_v27  ;;  %v527_v36 = vmul.f32 %v910_v22, %v180_v27 }
  0x84   :  { %143 = vrot.lane.b32.xlu1 %v126_v14, %s816_s15  ;;  %141 = vrot.lane.b32.xlu0 %v125_v15, %s816_s15 }
  0x85   :  { %v115_v18 = vpop.permute.xlu0 %114  ;;  %v184_v32 = vpop.permute.xlu1 %183 }
  0x86   :  { %v128_v19 = vmul.f32 %v115_v18, %v891_v16  ;;  %v127_v20 = vmul.f32 %v115_v18, %v896_v17  ;;  %v478_v28 = vmul.f32 %v919_v25, %v115_v18  ;;  %v477_v29 = vmul.f32 %v924_v26, %v115_v18 }
  0x87   :  { %v197_v33 = vmul.f32 %v184_v32, %v891_v16  ;;  %v196_v34 = vmul.f32 %v184_v32, %v896_v17  ;;  %v530_v37 = vmul.f32 %v919_v25, %v184_v32  ;;  %v529_v38 = vmul.f32 %v924_v26, %v184_v32 }
  0x88   :  { %147 = vrot.lane.b32.xlu1 %v128_v19, %s816_s15  ;;  %145 = vrot.lane.b32.xlu0 %v127_v20, %s816_s15 }
  0x89   :  { %v119_v39 = vpop.permute.xlu0 %118 }
  0x8a   :  { %v123_v42 = vpop.permute.xlu1 %122  ;;  %v130_v45 = vmul.f32 %v119_v39, %v949_v40  ;;  %v129_v46 = vmul.f32 %v119_v39, %v954_v41  ;;  %v480_v51 = vmul.f32 %v977_v49, %v119_v39  ;;  %v479_v52 = vmul.f32 %v982_v50, %v119_v39 }
  0x8b   :  { %v132_v47 = vmul.f32 %v123_v42, %v961_v43  ;;  %v131_v48 = vmul.f32 %v123_v42, %v966_v44  ;;  %v482_v56 = vmul.f32 %v991_v53, %v123_v42  ;;  %v481_v57 = vmul.f32 %v996_v54, %v123_v42 }
  0x8c   :  { %493 = vrot.lane.b32.xlu1 %v476_v23, %s816_s15  ;;  %491 = vrot.lane.b32.xlu0 %v475_v24, %s816_s15 }
  0x8e   :  { %v188_v55 = vpop.permute.xlu0 %187 }
  0x8f   :  { %v199_v58 = vmul.f32 %v188_v55, %v949_v40  ;;  %v198_v59 = vmul.f32 %v188_v55, %v954_v41  ;;  %v192_v60 = vpop.permute.xlu1 %191  ;;  %v532_v0 = vmul.f32 %v977_v49, %v188_v55  ;;  %v531_v1 = vmul.f32 %v982_v50, %v188_v55 }
  0x90   :  { %497 = vrot.lane.b32.xlu1 %v478_v28, %s816_s15  ;;  %495 = vrot.lane.b32.xlu0 %v477_v29, %s816_s15  ;;  %v201_v61 = vmul.f32 %v192_v60, %v961_v43  ;;  %v200_v62 = vmul.f32 %v192_v60, %v966_v44  ;;  %v534_v2 = vmul.f32 %v991_v53, %v192_v60 }
  0x91   :  { %v533_v3 = vmul.f32 %v996_v54, %v192_v60 }
  0x93   :  { %v61_v19 = vpop.permute.xlu0 %60 }
  0x94   :  { %212 = vrot.lane.b32.xlu1 %v195_v30, %s817_s24  ;;  %210 = vrot.lane.b32.xlu0 %v194_v31, %s817_s24  ;;  %v56_v14 = vpop.permute.xlu1 %55  ;;  %v75_v39 = vmul.f32 %v61_v19, %v896_v17  ;;  %v462_v60 = vmul.f32 %v919_v25, %v61_v19 }
  0x95   :  { %v459_v17 = vmul.f32 %v910_v22, %v56_v14 }
  0x97   :  { %v1048_v23 = vpop.permute.xlu0 %65 }
  0x98   :  { %216 = vrot.lane.b32.xlu1 %v197_v33, %s817_s24  ;;  %214 = vrot.lane.b32.xlu0 %v196_v34, %s817_s24  ;;  %v84_v15 = vpop.permute.xlu1 %83  ;;  %v74_v34 = vmul.f32 %v56_v14, %v879_v11 }
  0x9a   :  { %v102_v42 = vadd.f32 %v84_v15, %v74_v34 }
  0x9b   :  { %v1052_v27 = vpop.permute.xlu0 %93 }
  0x9c   :  { %545 = vrot.lane.b32.xlu1 %v528_v35, %s817_s24  ;;  %543 = vrot.lane.b32.xlu0 %v527_v36, %s817_s24  ;;  %v89_v18 = vpop.permute.xlu1 %88  ;;  %v73_v35 = vmul.f32 %v56_v14, %v884_v12 }
  0xa0   :  { %549 = vrot.lane.b32.xlu1 %v530_v37, %s817_s24  ;;  %547 = vrot.lane.b32.xlu0 %v529_v38, %s817_s24  ;;  %v1046_v20 = vpop.permute.xlu1 %70  ;;  %v76_v38 = vmul.f32 %v61_v19, %v891_v16  ;;  %v460_v16 = vmul.f32 %v905_v21, %v56_v14 }
  0xa4   :  { %151 = vrot.lane.b32.xlu1 %v130_v45, %s816_s15  ;;  %149 = vrot.lane.b32.xlu0 %v129_v46, %s816_s15  ;;  %v1050_v24 = vpop.permute.xlu1 %98  ;;  %v101_v46 = vadd.f32 %v84_v15, %v73_v35 }
  0xa8   :  { %155 = vrot.lane.b32.xlu1 %v132_v47, %s816_s15  ;;  %153 = vrot.lane.b32.xlu0 %v131_v48, %s816_s15 }
  0xac   :  { %501 = vrot.lane.b32.xlu1 %v480_v51, %s816_s15  ;;  %499 = vrot.lane.b32.xlu0 %v479_v52, %s816_s15  ;;  %v104_v52 = vadd.f32 %v89_v18, %v76_v38 }
  0xb0   :  { %505 = vrot.lane.b32.xlu1 %v482_v56, %s816_s15  ;;  %503 = vrot.lane.b32.xlu0 %v481_v57, %s816_s15  ;;  %v103_v56 = vadd.f32 %v89_v18, %v75_v39 }
  0xb4   :  { %220 = vrot.lane.b32.xlu1 %v199_v58, %s817_s24  ;;  %218 = vrot.lane.b32.xlu0 %v198_v59, %s817_s24 }
  0xb8   :  { %224 = vrot.lane.b32.xlu1 %v201_v61, %s817_s24  ;;  %222 = vrot.lane.b32.xlu0 %v200_v62, %s817_s24 }
  0xbc   :  { %553 = vrot.lane.b32.xlu1 %v532_v0, %s817_s24  ;;  %551 = vrot.lane.b32.xlu0 %v531_v1, %s817_s24 }
  0xc0   :  { %557 = vrot.lane.b32.xlu1 %v534_v2, %s817_s24  ;;  %555 = vrot.lane.b32.xlu0 %v533_v3, %s817_s24  ;;  %v461_v3 = vmul.f32 %v924_v26, %v61_v19 }
  0xc2   :  { %v469_v26 = vadd.f32 %v461_v3, %v89_v18 }
  0xc4   :  { %262 = vperm.xlu1 %787, %v38_v4   ;;  %257 = vperm.xlu0 %788, %v37_v5   ;;  %v468_v5 = vadd.f32 %v460_v16, %v84_v15  ;;  %v77_v16 = vmul.f32 %v1048_v23, %v954_v41 }
  0xc8   :  { %272 = vperm.xlu1 %787, %v40_v6   ;;  %267 = vperm.xlu0 %788, %v39_v7  }
  0xcc   :  { %282 = vperm.xlu1 %787, %v42_v8   ;;  %277 = vperm.xlu0 %788, %v41_v9   ;;  %v467_v8 = vadd.f32 %v459_v17, %v84_v15  ;;  %v470_v9 = vadd.f32 %v462_v60, %v89_v18  ;;  %v79_v60 = vmul.f32 %v1046_v20, %v966_v44 }
  0xcd   :  { %v464_v44 = vmul.f32 %v977_v49, %v1048_v23 }
  0xcf   :  { %v472_v49 = vadd.f32 %v464_v44, %v1052_v27 }
  0xd0   :  { %292 = vperm.xlu1 %787, %v44_v10   ;;  %287 = vperm.xlu0 %788, %v43_v13  }
  0xf6   :  { %v144_v28 = vpop.permute.xlu1 %143  ;;  %v142_v29 = vpop.permute.xlu0 %141 }
  0xf7   :  { %v158_v45 = vsel %vm157_vm0, %v142_v29, %v144_v28  ;;  %v171_v51 = vadd.f32 %v144_v28, %v102_v42 }
  0xf8   :  { %v170_v55 = vadd.f32 %v158_v45, %v101_v46 }
  0xfa   :  { %v148_v30 = vpop.permute.xlu1 %147  ;;  %v146_v31 = vpop.permute.xlu0 %145 }
  0xfb   :  { %v159_v11 = vsel %vm157_vm0, %v146_v31, %v148_v30  ;;  %v173_v57 = vadd.f32 %v148_v30, %v104_v52 }
  0xfc   :  { %v172_v59 = vadd.f32 %v159_v11, %v103_v56 }
  0xfe   :  { %v494_v32 = vpop.permute.xlu1 %493  ;;  %v492_v33 = vpop.permute.xlu0 %491 }
  0xff   :  { %v507_v6 = vsel %vm157_vm0, %v492_v33, %v494_v32  ;;  %v520_v14 = vadd.f32 %v494_v32, %v468_v5 }
 0x100   :  { %v519_v31 = vadd.f32 %v507_v6, %v467_v8 }
 0x102   :  { %v498_v36 = vpop.permute.xlu1 %497  ;;  %v496_v37 = vpop.permute.xlu0 %495 }
 0x103   :  { %v508_v28 = vsel %vm157_vm0, %v496_v37, %v498_v36  ;;  %v522_v34 = vadd.f32 %v498_v36, %v470_v9  ;;  %v466_v9 = vmul.f32 %v991_v53, %v1046_v20 }
 0x104   :  { %v521_v33 = vadd.f32 %v508_v28, %v469_v26  ;;  %v465_v28 = vmul.f32 %v996_v54, %v1046_v20 }
 0x105   :  { %v474_v53 = vadd.f32 %v466_v9, %v1050_v24 }
 0x106   :  { %v213_v47 = vpop.permute.xlu1 %212  ;;  %v211_v48 = vpop.permute.xlu0 %210 }
 0x107   :  { %v227_v12 = vsel %vm226_vm1, %v211_v48, %v213_v47  ;;  %v240_v58 = vadd.f32 %v213_v47, %v171_v51 }
 0x108   :  { %v239_v61 = vadd.f32 %v227_v12, %v170_v55 }
 0x109   :  { %v248_v7 = vmax.f32 %v240_v58, 0.0 }
 0x10a   :  { %v217_v62 = vpop.permute.xlu1 %216  ;;  %v215_v0 = vpop.permute.xlu0 %214  ;;  %v247_v22 = vmax.f32 %v239_v61, 0.0 }
 0x10b   :  { %v242_v1 = vadd.f32 %v217_v62, %v173_v57  ;;  %v228_v2 = vsel %vm226_vm1, %v215_v0, %v217_v62  ;;  %v78_v57 = vmul.f32 %v1048_v23, %v949_v40  ;;  %v105_v0 = vadd.f32 %v1052_v27, %v77_v16  ;;  %v31_v16 = vld [vmem:[%s1187_s3 + $0x10] sm:$0xff] }
 0x10c   :  { %v241_v4 = vadd.f32 %v228_v2, %v172_v59  ;;  %v80_v59 = vmul.f32 %v1046_v20, %v961_v43  ;;  %v107_v43 = vadd.f32 %v1050_v24, %v79_v60  ;;  %v35_v60 = vld [vmem:[%s1187_s3 + $0x30] sm:$0xff] }
 0x10d   :  { %v250_v21 = vmax.f32 %v242_v1, 0.0  ;;  %v106_v61 = vadd.f32 %v1052_v27, %v78_v57 }
 0x10e   :  { %v249_v10 = vmax.f32 %v241_v4, 0.0  ;;  %v546_v13 = vpop.permute.xlu1 %545  ;;  %v544_v25 = vpop.permute.xlu0 %543  ;;  %v108_v3 = vadd.f32 %v1050_v24, %v80_v59  ;;  %v34_v59 = vld [vmem:[%s1187_s3 + $0x28] sm:$0xff] }
 0x10f   :  { %v559_v29 = vsel %vm226_vm1, %v544_v25, %v546_v13  ;;  %v757_v30 = vpack.c.bf16 %v250_v21, %v248_v7  ;;  %v572_v35 = vadd.f32 %v546_v13, %v520_v14  ;;  %v463_v21 = vmul.f32 %v982_v50, %v1048_v23 }
 0x110   :  { %v759_v19 = vpack.c.bf16 %v249_v10, %v247_v22  ;;  %v571_v38 = vadd.f32 %v559_v29, %v519_v31 }
 0x111   :  { %758 = vmatprep.subr.bf16.mxu0 %v757_v30  ;;  %v580_v46 = vmax.f32 %v572_v35, 0.0  ;;  %v471_v23 = vadd.f32 %v463_v21, %v1052_v27 }
 0x112   :  { %v550_v15 = vpop.permute.xlu1 %549  ;;  %760 = vmatpush1.bf16.msra.mxu0 %v759_v19  ;;  %v548_v39 = vpop.permute.xlu0 %547  ;;  %v579_v47 = vmax.f32 %v571_v38, 0.0 }
 0x113   :  { %v574_v42 = vadd.f32 %v550_v15, %v522_v34  ;;  %v560_v45 = vsel %vm226_vm1, %v548_v39, %v550_v15  ;;  %v473_v39 = vadd.f32 %v465_v28, %v1050_v24 }
 0x114   :  { %v573_v32 = vadd.f32 %v560_v45, %v521_v33 }
 0x115   :  { %v582_v37 = vmax.f32 %v574_v42, 0.0 }
 0x116   :  { %v581_v48 = vmax.f32 %v573_v32, 0.0  ;;  %v152_v51 = vpop.permute.xlu1 %151  ;;  %v150_v52 = vpop.permute.xlu0 %149 }
 0x117   :  { %v765_v18 = vpack.c.bf16 %v582_v37, %v580_v46  ;;  %v160_v62 = vsel %vm157_vm0, %v150_v52, %v152_v51  ;;  %v175_v40 = vadd.f32 %v152_v51, %v106_v61  ;;  %v36_v61 = vld [vmem:[%s1187_s3 + $0x38] sm:$0xff] }
 0x118   :  { %v767_v11 = vpack.c.bf16 %v581_v48, %v579_v47  ;;  %v174_v5 = vadd.f32 %v160_v62, %v105_v0  ;;  %v29_v48 = vld [vmem:[%s1187_s3] sm:$0xff] }
 0x119   :  { %766 = vmatprep.subr.bf16.mxu1 %v765_v18 }
 0x11a   :  { %v156_v36 = vpop.permute.xlu1 %155  ;;  %768 = vmatpush1.bf16.msra.mxu1 %v767_v11  ;;  %v154_v12 = vpop.permute.xlu0 %153 }
 0x11b   :  { %v161_v41 = vsel %vm157_vm0, %v154_v12, %v156_v36  ;;  %v177_v6 = vadd.f32 %v156_v36, %v108_v3 }
 0x11c   :  { %v176_v8 = vadd.f32 %v161_v41, %v107_v43 }
 0x11e   :  { %v502_v55 = vpop.permute.xlu1 %501  ;;  %v500_v56 = vpop.permute.xlu0 %499 }
 0x11f   :  { %v509_v30 = vsel %vm157_vm0, %v500_v56, %v502_v55  ;;  %v524_v33 = vadd.f32 %v502_v55, %v472_v49  ;;  %v30_v55 = vld [vmem:[%s1187_s3 + $0x8] sm:$0xff] }
 0x120   :  { %v523_v15 = vadd.f32 %v509_v30, %v471_v23 }
 0x122   :  { %v506_v58 = vpop.permute.xlu1 %505  ;;  %v504_v17 = vpop.permute.xlu0 %503 }
 0x123   :  { %v510_v38 = vsel %vm157_vm0, %v504_v17, %v506_v58  ;;  %v526_v45 = vadd.f32 %v506_v58, %v474_v53  ;;  %v32_v58 = vld [vmem:[%s1187_s3 + $0x18] sm:$0xff]  ;;  %v33_v17 = vld [vmem:[%s1187_s3 + $0x20] sm:$0xff]  ;;  %s819_s3 = smov [#allocation2]  }
 0x124   :  { %v525_v27 = vadd.f32 %v510_v38, %v473_v39  ;;  %s722_s16 = sshll.u32 %s819_s3, 4  ;;  %s723_s16 = int_to_ptr.vmem [resolvable:$true] %s722_s16 }
 0x125   :  { %s789_s17 = scalar_lea.vmem %s723_s16, 4096  ;;  %p794_p1 = scmp.lt.s32.totalorder %s723_s16, %s723_s16 }
 0x126   :  { %v221_v1 = vpop.permute.xlu1 %220  ;;  %v219_v2 = vpop.permute.xlu0 %218  ;;  %p790_p0 = scmp.ne.s32.totalorder %s723_s16, %s789_s17  ;;  %p795_p2 = scmp.lt.s32.totalorder %s789_s17, %s789_s17 }
 0x127   :  { %v229_v4 = vsel %vm226_vm1, %v219_v2, %v221_v1  ;;  %v244_v7 = vadd.f32 %v221_v1, %v175_v40 }
 0x128   :  { %v243_v22 = vadd.f32 %v229_v4, %v174_v5  ;;  %p796_p3 = por %p795_p2, %p794_p1 }
 0x129   :  { %v252_v31 = vmax.f32 %v244_v7, 0.0 }
 0x12a   :  { %v225_v10 = vpop.permute.xlu1 %224  ;;  %v223_v13 = vpop.permute.xlu0 %222  ;;  %v251_v26 = vmax.f32 %v243_v22, 0.0  ;;  %p797_p4 = pnand %p796_p3, %p790_p0 }
 0x12b   :  { %v246_v25 = vadd.f32 %v225_v10, %v177_v6  ;;  %v230_v14 = vsel %vm226_vm1, %v223_v13, %v225_v10 }
 0x12c   :  { %v245_v29 = vadd.f32 %v230_v14, %v176_v8 }
 0x12d   :  { %v254_v50 = vmax.f32 %v246_v25, 0.0 }
 0x12e   :  { %v253_v19 = vmax.f32 %v245_v29, 0.0  ;;  %v554_v34 = vpop.permute.xlu1 %553  ;;  %v552_v35 = vpop.permute.xlu0 %551 }
 0x12f   :  { %v561_v54 = vsel %vm226_vm1, %v552_v35, %v554_v34  ;;  %v761_v20 = vpack.c.bf16 %v254_v50, %v252_v31  ;;  %v576_v32 = vadd.f32 %v554_v34, %v524_v33 }
 0x130   :  { %v763_v42 = vpack.c.bf16 %v253_v19, %v251_v26  ;;  %v575_v46 = vadd.f32 %v561_v54, %v523_v15 }
 0x131   :  { %762 = vmatprep.subr.bf16.mxu0 %v761_v20  ;;  %v584_v11 = vmax.f32 %v576_v32, 0.0 }
 0x132   :  { %v558_v37 = vpop.permute.xlu1 %557  ;;  %764 = vmatpush1.bf16.msra.mxu0 %v763_v42  ;;  %v556_v47 = vpop.permute.xlu0 %555  ;;  %v583_v36 = vmax.f32 %v575_v46, 0.0 }
 0x133   :  { %v578_v51 = vadd.f32 %v558_v37, %v526_v45  ;;  %v562_v52 = vsel %vm226_vm1, %v556_v47, %v558_v37 }
 0x134   :  { %v577_v18 = vadd.f32 %v562_v52, %v525_v27 }
 0x135   :  { %v586_v24 = vmax.f32 %v578_v51, 0.0  ;;  %733 = vmatmul.mubr.msk.f32.vlgmr.msra.gmra.mrb[0].mxu0 %vm295_vm2, %v29_v48 }
 0x136   :  { %v585_v12 = vmax.f32 %v577_v18, 0.0  ;;  %390 = vmatprep.mubr.f32.mxu0 %v818_v63 }
 0x137   :  { %v769_v56 = vpack.c.bf16 %v586_v24, %v584_v11 }
 0x138   :  { %v771_v57 = vpack.c.bf16 %v585_v12, %v583_v36 }
 0x139   :  { %734 = vmatmul.mubr.msk.f32.gmra.mrb[2].mxu0 %vm295_vm2, %v30_v55  ;;  %770 = vmatprep.subr.bf16.mxu1 %v769_v56 }
 0x13a   :  { %772 = vmatpush1.bf16.msra.mxu1 %v771_v57  ;;  %396 = vmatprep.mubr.f32.mxu0 %v818_v63 }
 0x13d   :  { %735 = vmatmul.mubr.msk.f32.gmra.mrb[4].mxu0 %vm295_vm2, %v31_v16  ;;  %749 = vmatmul.mubr.msk.f32.vlgmr.msra.gmra.mrb[0].mxu1 %vm295_vm2, %v29_v48 }
 0x13e   :  { %402 = vmatprep.mubr.f32.mxu0 %v818_v63  ;;  %657 = vmatprep.mubr.f32.mxu1 %v818_v63 }
 0x141   :  { %736 = vmatmul.mubr.msk.f32.gmra.mrb[6].mxu0 %vm295_vm2, %v32_v58  ;;  %750 = vmatmul.mubr.msk.f32.gmra.mrb[2].mxu1 %vm295_vm2, %v30_v55 }
 0x142   :  { %408 = vmatprep.mubr.f32.mxu0 %v818_v63  ;;  %663 = vmatprep.mubr.f32.mxu1 %v818_v63 }
 0x143   :  { %v258_v62 = vpop.permute.xlu0 %257  ;;  %v263_v3 = vpop.permute.xlu1 %262 }
 0x145   :  { %737 = vmatmul.mubr.msk.f32.gmra.mrb[8].mxu0 %vm295_vm2, %v33_v17  ;;  %751 = vmatmul.mubr.msk.f32.gmra.mrb[4].mxu1 %vm295_vm2, %v31_v16 }
 0x146   :  { %414 = vmatprep.mubr.f32.mxu0 %v818_v63  ;;  %669 = vmatprep.mubr.f32.mxu1 %v818_v63 }
 0x147   :  { %v268_v6 = vpop.permute.xlu0 %267  ;;  %v273_v13 = vpop.permute.xlu1 %272 }
 0x149   :  { %738 = vmatmul.mubr.msk.f32.gmra.mrb[10].mxu0 %vm295_vm2, %v34_v59  ;;  %752 = vmatmul.mubr.msk.f32.gmra.mrb[6].mxu1 %vm295_vm2, %v32_v58 }
 0x14a   :  { %420 = vmatprep.mubr.f32.mxu0 %v818_v63  ;;  %675 = vmatprep.mubr.f32.mxu1 %v818_v63 }
 0x14b   :  { %v278_v23 = vpop.permute.xlu0 %277  ;;  %v283_v20 = vpop.permute.xlu1 %282 }
 0x14d   :  { %739 = vmatmul.mubr.msk.f32.gmra.mrb[12].mxu0 %vm295_vm2, %v35_v60  ;;  %753 = vmatmul.mubr.msk.f32.gmra.mrb[8].mxu1 %vm295_vm2, %v33_v17 }
 0x14e   :  { %426 = vmatprep.mubr.f32.mxu0 %v818_v63  ;;  %681 = vmatprep.mubr.f32.mxu1 %v818_v63 }
 0x14f   :  { %v288_v47 = vpop.permute.xlu0 %287  ;;  %v293_v55 = vpop.permute.xlu1 %292 }
 0x151   :  { %740 = vmatmul.mubr.msk.f32.gmra.mrb[14].mxu0 %vm295_vm2, %v36_v61  ;;  %754 = vmatmul.mubr.msk.f32.gmra.mrb[10].mxu1 %vm295_vm2, %v34_v59 }
 0x152   :  { %687 = vmatprep.mubr.f32.mxu1 %v818_v63 }
 0x155   :  { %755 = vmatmul.mubr.msk.f32.gmra.mrb[12].mxu1 %vm295_vm2, %v35_v60 }
 0x156   :  { %693 = vmatprep.mubr.f32.mxu1 %v818_v63 }
 0x159   :  { %756 = vmatmul.mubr.msk.f32.gmra.mrb[14].mxu1 %vm295_vm2, %v36_v61 }
 0x208   :  { %v386_v0 = vpop.f32.mrb[0].mxu0 }
 0x209   :  { %v387_v1 = vadd.f32 %v386_v0, %v258_v62  ;;  %v388_v2 = vpop.f32.mrb[1].mxu0 }
 0x20a   :  { %v389_v40 = vadd.f32 %v388_v2, %v258_v62 }
 0x20b   :  { %433 = vst [vmem:[#allocation2] sm:$0xff] %v387_v1 }
 0x20c   :  { %435 = vst.msk [vmem:[#allocation2 + $0x8] sm:$0xff] %vm434_vm3, %v389_v40  ;;  %v392_v41 = vpop.f32.mrb[2].mxu0 }
 0x20d   :  { %v393_v4 = vadd.f32 %v392_v41, %v263_v3  ;;  %v394_v5 = vpop.f32.mrb[3].mxu0 }
 0x20e   :  { %v395_v43 = vadd.f32 %v394_v5, %v263_v3 }
 0x20f   :  { %436 = vst [vmem:[#allocation2 + $0x10] sm:$0xff] %v393_v4 }
 0x210   :  { %437 = vst.msk [vmem:[#allocation2 + $0x18] sm:$0xff] %vm434_vm3, %v395_v43  ;;  %v398_v63 = vpop.f32.mrb[4].mxu0  ;;  %v653_v44 = vpop.f32.mrb[0].mxu1 }
 0x211   :  { %v399_v7 = vadd.f32 %v398_v63, %v268_v6  ;;  %v654_v21 = vadd.f32 %v653_v44, %v258_v62  ;;  %v400_v8 = vpop.f32.mrb[5].mxu0  ;;  %v655_v9 = vpop.f32.mrb[1].mxu1 }
 0x212   :  { %v401_v22 = vadd.f32 %v400_v8, %v268_v6  ;;  %v656_v10 = vadd.f32 %v655_v9, %v258_v62 }
 0x213   :  { %438 = vst [vmem:[#allocation2 + $0x20] sm:$0xff] %v399_v7  ;;  %701 = vst [vmem:[#allocation2 + $0x80] sm:$0xff] %v654_v21 }
 0x214   :  { %439 = vst.msk [vmem:[#allocation2 + $0x28] sm:$0xff] %vm434_vm3, %v401_v22  ;;  %702 = vst.msk [vmem:[#allocation2 + $0x88] sm:$0xff] %vm434_vm3, %v656_v10  ;;  %v404_v25 = vpop.f32.mrb[6].mxu0  ;;  %v659_v14 = vpop.f32.mrb[2].mxu1 }
 0x215   :  { %v405_v28 = vadd.f32 %v404_v25, %v273_v13  ;;  %v660_v29 = vadd.f32 %v659_v14, %v263_v3  ;;  %v406_v49 = vpop.f32.mrb[7].mxu0  ;;  %v661_v30 = vpop.f32.mrb[3].mxu1 }
 0x216   :  { %v407_v31 = vadd.f32 %v406_v49, %v273_v13  ;;  %v662_v50 = vadd.f32 %v661_v30, %v263_v3 }
 0x217   :  { %440 = vst [vmem:[#allocation2 + $0x30] sm:$0xff] %v405_v28  ;;  %703 = vst [vmem:[#allocation2 + $0x90] sm:$0xff] %v660_v29 }
 0x218   :  { %441 = vst.msk [vmem:[#allocation2 + $0x38] sm:$0xff] %vm434_vm3, %v407_v31  ;;  %704 = vst.msk [vmem:[#allocation2 + $0x98] sm:$0xff] %vm434_vm3, %v662_v50  ;;  %v410_v53 = vpop.f32.mrb[8].mxu0  ;;  %v665_v26 = vpop.f32.mrb[4].mxu1 }
 0x219   :  { %v411_v19 = vadd.f32 %v410_v53, %v278_v23  ;;  %v666_v34 = vadd.f32 %v665_v26, %v268_v6  ;;  %v412_v35 = vpop.f32.mrb[9].mxu0  ;;  %v667_v33 = vpop.f32.mrb[5].mxu1 }
 0x21a   :  { %v413_v38 = vadd.f32 %v412_v35, %v278_v23  ;;  %v668_v54 = vadd.f32 %v667_v33, %v268_v6 }
 0x21b   :  { %442 = vst [vmem:[#allocation2 + $0x40] sm:$0xff] %v411_v19  ;;  %705 = vst [vmem:[#allocation2 + $0xa0] sm:$0xff] %v666_v34 }
 0x21c   :  { %443 = vst.msk [vmem:[#allocation2 + $0x48] sm:$0xff] %vm434_vm3, %v413_v38  ;;  %706 = vst.msk [vmem:[#allocation2 + $0xa8] sm:$0xff] %vm434_vm3, %v668_v54  ;;  %v416_v15 = vpop.f32.mrb[10].mxu0  ;;  %v671_v39 = vpop.f32.mrb[6].mxu1 }
 0x21d   :  { %v417_v42 = vadd.f32 %v416_v15, %v283_v20  ;;  %v672_v45 = vadd.f32 %v671_v39, %v273_v13  ;;  %v418_v32 = vpop.f32.mrb[11].mxu0  ;;  %v673_v27 = vpop.f32.mrb[7].mxu1 }
 0x21e   :  { %v419_v46 = vadd.f32 %v418_v32, %v283_v20  ;;  %v674_v37 = vadd.f32 %v673_v27, %v273_v13 }
 0x21f   :  { %444 = vst [vmem:[#allocation2 + $0x50] sm:$0xff] %v417_v42  ;;  %707 = vst [vmem:[#allocation2 + $0xb0] sm:$0xff] %v672_v45 }
 0x220   :  { %445 = vst.msk [vmem:[#allocation2 + $0x58] sm:$0xff] %vm434_vm3, %v419_v46  ;;  %708 = vst.msk [vmem:[#allocation2 + $0xb8] sm:$0xff] %vm434_vm3, %v674_v37  ;;  %v422_v48 = vpop.f32.mrb[12].mxu0  ;;  %v677_v51 = vpop.f32.mrb[8].mxu1 }
 0x221   :  { %v423_v52 = vadd.f32 %v422_v48, %v288_v47  ;;  %v678_v18 = vadd.f32 %v677_v51, %v278_v23  ;;  %v424_v11 = vpop.f32.mrb[13].mxu0  ;;  %v679_v24 = vpop.f32.mrb[9].mxu1 }
 0x222   :  { %v425_v36 = vadd.f32 %v424_v11, %v288_v47  ;;  %v680_v12 = vadd.f32 %v679_v24, %v278_v23 }
 0x223   :  { %446 = vst [vmem:[#allocation2 + $0x60] sm:$0xff] %v423_v52  ;;  %709 = vst [vmem:[#allocation2 + $0xc0] sm:$0xff] %v678_v18 }
 0x224   :  { %447 = vst.msk [vmem:[#allocation2 + $0x68] sm:$0xff] %vm434_vm3, %v425_v36  ;;  %710 = vst.msk [vmem:[#allocation2 + $0xc8] sm:$0xff] %vm434_vm3, %v680_v12  ;;  %v428_v56 = vpop.f32.mrb[14].mxu0  ;;  %v683_v57 = vpop.f32.mrb[10].mxu1 }
 0x225   :  { %v429_v16 = vadd.f32 %v428_v56, %v293_v55  ;;  %v684_v58 = vadd.f32 %v683_v57, %v283_v20  ;;  %v430_v17 = vpop.f32.mrb[15].mxu0  ;;  %v685_v59 = vpop.f32.mrb[11].mxu1 }
 0x226   :  { %v431_v60 = vadd.f32 %v430_v17, %v293_v55  ;;  %v686_v61 = vadd.f32 %v685_v59, %v283_v20 }
 0x227   :  { %448 = vst [vmem:[#allocation2 + $0x70] sm:$0xff] %v429_v16  ;;  %711 = vst [vmem:[#allocation2 + $0xd0] sm:$0xff] %v684_v58 }
 0x228   :  { %449 = vst.msk [vmem:[#allocation2 + $0x78] sm:$0xff] %vm434_vm3, %v431_v60  ;;  %712 = vst.msk [vmem:[#allocation2 + $0xd8] sm:$0xff] %vm434_vm3, %v686_v61  ;;  %v689_v62 = vpop.f32.mrb[12].mxu1 }
 0x229   :  { %v690_v0 = vadd.f32 %v689_v62, %v288_v47  ;;  %v691_v1 = vpop.f32.mrb[13].mxu1 }
 0x22a   :  { %v692_v2 = vadd.f32 %v691_v1, %v288_v47 }
 0x22b   :  { %713 = vst [vmem:[#allocation2 + $0xe0] sm:$0xff] %v690_v0 }
 0x22c   :  { %714 = vst.msk [vmem:[#allocation2 + $0xe8] sm:$0xff] %vm434_vm3, %v692_v2  ;;  %v695_v40 = vpop.f32.mrb[14].mxu1 }
 0x22d   :  { %v696_v3 = vadd.f32 %v695_v40, %v293_v55  ;;  %v697_v41 = vpop.f32.mrb[15].mxu1 }
 0x22e   :  { %v698_v4 = vadd.f32 %v697_v41, %v293_v55 }
 0x22f   :  { %715 = vst [vmem:[#allocation2 + $0xf0] sm:$0xff] %v696_v3 }
 0x230   :  { %716 = vst.msk [vmem:[#allocation2 + $0xf8] sm:$0xff] %vm434_vm3, %v698_v4 }
 0x231   :  { %800 = shalt.err (!%p797_p4)
}
 0x232   :  { %s801_s20 = scalar_lea.hbm %s1189_s5, 4096 }
 0x233   :  { %p802_p5 = scmp.ne.s32.totalorder %s1189_s5, %s801_s20  ;;  %p805_p6 = scmp.lt.u32.totalorder %s801_s20, %s1189_s5 }
 0x235   :  { %p807_p7 = pnand %p805_p6, %p802_p5 }
 0x237   :  { %810 = shalt.err (!%p807_p7)
}
 0x238   :  { %s820_s25 = smov 256   ;;  %s821_s26 = smov 16  }
 0x239   :  { %728 = dma.vmem_to_hbm [thread:$0]  %s723_s16, 4096, %s1189_s5, [#allocation3], %s820_s25, %s820_s25, %s821_s26  }
 0x23a   :  { %811 = dma.done.wait [#allocation3], 4096  }
 0x23b   :  { %812 = vsyncadd [#allocation3], 4294963200 }
 0x23c   :  { %732 = vsyncpa [#allocation3], 1 }

</bundles_post_ra>
